<compile_context>
chip_gen: v7x
topology: tpu7x:2x2x1
jax: 0.10.0
libtpu: 0.0.40
codegen_flags: <defaults>
</compile_context>

<pallas_src>
import functools

import jax
import jax.numpy as jnp
from jax.experimental import pallas as pl
from jax.experimental.pallas import tpu as pltpu

EPS = 1e-5
NEG_SLOPE = 0.2

# 3x3 taps in (dy, dx) order matching the (ky, kx) flattening of the weights.
_TAPS = tuple((dy, dx) for dy in (-1, 0, 1) for dx in (-1, 0, 1))


def _residual_block_kernel(x_ref, w1_ref, b1_ref, w2_ref, b2_ref,
                           out_ref, stage_ref, col_ref, *, H, W, PAD):
    # x_ref    : (1, C, H*W)          one image; channels on sublanes, HW on lanes
    # w*_ref   : (C, 9*C)             conv weights, K index = (ky*3 + kx)*C + cin
    # b*_ref   : (C, 1)
    # out_ref  : (1, C, H*W)
    # stage_ref: VMEM (C, H*W + 2*PAD)   flat row buffer with zeroed halo strips
    # col_ref  : VMEM (9*C, H*W)         im2col operand for the fused matmul
    _, C, HW = x_ref.shape

    x = x_ref[0]                                     # (C, HW) f32

    # Zero the halo strips once per image (interior is rewritten per conv).
    # Reads that fall outside the real image along H land in these zeros.
    zeros_pad = jnp.zeros((C, PAD), jnp.float32)
    stage_ref[:, 0:PAD] = zeros_pad
    stage_ref[:, PAD + HW:2 * PAD + HW] = zeros_pad

    # Per-lane column index (p mod W), used to mask row wrap-around for the
    # dx = +/-1 taps.  Computed once, reused by both convolutions.
    pos = jax.lax.broadcasted_iota(jnp.int32, (C, HW), 1)
    if W & (W - 1) == 0:
        colx = jnp.bitwise_and(pos, W - 1)
    else:
        colx = jax.lax.rem(pos, W)
    left_ok = colx >= 1          # destination valid when dx == -1
    right_ok = colx <= W - 2     # destination valid when dx == +1

    def conv3x3(v, w_ref, b_ref):
        # v: (C, HW) activation in flat layout.
        stage_ref[:, PAD:PAD + HW] = v               # lane-aligned interior store
        for t, (dy, dx) in enumerate(_TAPS):
            off = PAD + dy * W + dx                  # static shifted flat window
            win = stage_ref[:, off:off + HW]
            if dx == -1:
                win = jnp.where(left_ok, win, 0.0)
            elif dx == 1:
                win = jnp.where(right_ok, win, 0.0)
            col_ref[t * C:(t + 1) * C, :] = win      # im2col rows for this tap
        # Single fused MXU matmul: (C, 9C) x (9C, HW) -> (C, HW), lane-dense N.
        y = jax.lax.dot_general(
            w_ref[...], col_ref[...],
            dimension_numbers=(((1,), (0,)), ((), ())),
            preferred_element_type=jnp.float32)
        return y + b_ref[...]                        # (C, HW) + (C, 1) broadcast

    def instance_norm(y):
        mu = jnp.mean(y, axis=1, keepdims=True)
        var = jnp.mean(jnp.square(y - mu), axis=1, keepdims=True)
        return (y - mu) * jax.lax.rsqrt(var + EPS)   # rsqrt -> EUP slot

    def leaky_relu(y):
        return jnp.where(y > 0, y, NEG_SLOPE * y)

    out1 = leaky_relu(instance_norm(conv3x3(x, w1_ref, b1_ref)))
    out2 = instance_norm(conv3x3(out1, w2_ref, b2_ref))
    out_ref[0] = leaky_relu(out2 + x).astype(out_ref.dtype)


def residual_block(x_nchw, w1, b1, w2, b2):
    """x_nchw: (N, C, H, W); w*: (Cout, Cin, 3, 3) PyTorch layout; b*: (Cout,)."""
    N, C, H, W = x_nchw.shape
    assert w1.shape == (C, C, 3, 3) and w2.shape == (C, C, 3, 3), \
        "ResidualBlock requires Cin == Cout == C with 3x3 kernels"
    HW = H * W
    # Halo strip must cover W+1 elements; round up to 128 so the interior
    # staging store stays lane-aligned.
    pad = ((W + 1 + 127) // 128) * 128

    # NCHW -> (N, C, H*W): free reshape, no transpose / HBM shuffle.
    x_flat = x_nchw.reshape(N, C, HW).astype(jnp.float32)

    def prep_w(w):
        # (Cout, Cin, ky, kx) -> (Cout, ky, kx, Cin) -> (Cout, 9*Cin)
        return jnp.transpose(w, (0, 2, 3, 1)).reshape(C, 9 * C).astype(jnp.float32)

    w1m, w2m = prep_w(w1), prep_w(w2)
    b1c = b1.reshape(C, 1).astype(jnp.float32)
    b2c = b2.reshape(C, 1).astype(jnp.float32)

    kernel = functools.partial(_residual_block_kernel, H=H, W=W, PAD=pad)

    out_flat = pl.pallas_call(
        kernel,
        out_shape=jax.ShapeDtypeStruct((N, C, HW), jnp.float32),
        grid_spec=pltpu.PrefetchScalarGridSpec(
            num_scalar_prefetch=0,
            grid=(N,),                               # one image per grid step
            in_specs=[
                pl.BlockSpec((1, C, HW), lambda n: (n, 0, 0)),
                pl.BlockSpec((C, 9 * C), lambda n: (0, 0)),   # resident weights
                pl.BlockSpec((C, 1), lambda n: (0, 0)),
                pl.BlockSpec((C, 9 * C), lambda n: (0, 0)),
                pl.BlockSpec((C, 1), lambda n: (0, 0)),
            ],
            out_specs=pl.BlockSpec((1, C, HW), lambda n: (n, 0, 0)),
            scratch_shapes=[
                pltpu.VMEM((C, HW + 2 * pad), jnp.float32),   # staging rows
                pltpu.VMEM((9 * C, HW), jnp.float32),         # im2col operand
            ],
        ),
        compiler_params=pltpu.CompilerParams(
            dimension_semantics=("parallel",),
            vmem_limit_bytes=32 * 1024 * 1024,
        ),
    )(x_flat, w1m, b1c, w2m, b2c)

    return out_flat.reshape(N, C, H, W)


def _reference_forward(x, w1, b1, w2, b2):
    """Pure-JAX reference matching the PyTorch ResidualBlock forward."""
    def conv(x, w, b):
        y = jax.lax.conv_general_dilated(
            x, w, window_strides=(1, 1), padding="SAME",
            dimension_numbers=("NCHW", "OIHW", "NCHW"),
            precision=jax.lax.Precision.HIGHEST)
        return y + b.reshape(1, -1, 1, 1)

    def inorm(y):
        mu = jnp.mean(y, axis=(2, 3), keepdims=True)
        var = jnp.mean(jnp.square(y - mu), axis=(2, 3), keepdims=True)
        return (y - mu) * jax.lax.rsqrt(var + EPS)

    def lrelu(y):
        return jnp.where(y > 0, y, NEG_SLOPE * y)

    out = lrelu(inorm(conv(x, w1, b1)))
    out = inorm(conv(out, w2, b2))
    return lrelu(out + x)


if __name__ == "__main__":
    N, C, H, W = 2, 4, 16, 16

    key = jax.random.PRNGKey(0)
    kx, kw1, kb1, kw2, kb2 = jax.random.split(key, 5)

    x = jax.random.normal(kx, (N, C, H, W), dtype=jnp.float32)
    # Deterministic synthetic parameters (same shapes as nn.Conv2d(C, C, 3, padding=1)).
    w1 = 0.1 * jax.random.normal(kw1, (C, C, 3, 3), dtype=jnp.float32)
    b1 = 0.1 * jax.random.normal(kb1, (C,), dtype=jnp.float32)
    w2 = 0.1 * jax.random.normal(kw2, (C, C, 3, 3), dtype=jnp.float32)
    b2 = 0.1 * jax.random.normal(kb2, (C,), dtype=jnp.float32)

    out = jax.block_until_ready(residual_block(x, w1, b1, w2, b2))
    ref = jax.block_until_ready(_reference_forward(x, w1, b1, w2, b2))

    assert out.shape == (N, C, H, W)
    max_err = float(jnp.max(jnp.abs(out - ref)))
    assert max_err < 1e-3, f"max abs err = {max_err}"

    print("KERNEL_OK")
</pallas_src>

<mosaic_0001>
module attributes {stable_mosaic.version = 11 : i64} {
  func.func @_residual_block_kernel(%arg0: i32, %arg1: memref<1x4x256xf32, #tpu.memory_space<vmem>>, %arg2: memref<4x36xf32, #tpu.memory_space<vmem>>, %arg3: memref<4x1xf32, #tpu.memory_space<vmem>>, %arg4: memref<4x36xf32, #tpu.memory_space<vmem>>, %arg5: memref<4x1xf32, #tpu.memory_space<vmem>>, %arg6: memref<1x4x256xf32, #tpu.memory_space<vmem>>, %arg7: memref<4x512xf32, #tpu.memory_space<vmem>>, %arg8: memref<36x256xf32, #tpu.memory_space<vmem>>) attributes {dimension_semantics = [#tpu.dimension_semantics<parallel>], iteration_bounds = array<i64: 2>, scalar_prefetch = 0 : i64, scratch_operands = 2 : i64, tpu.core_type = #tpu.core_type<tc>, window_params = [{transform_indices = @transform_0, window_bounds = array<i64: 1, 4, 256>}, {pipeline_mode = #tpu.pipeline_mode<synchronous>, transform_indices = @transform_1, window_bounds = array<i64: 4, 36>}, {pipeline_mode = #tpu.pipeline_mode<synchronous>, transform_indices = @transform_2, window_bounds = array<i64: 4, 1>}, {pipeline_mode = #tpu.pipeline_mode<synchronous>, transform_indices = @transform_3, window_bounds = array<i64: 4, 36>}, {pipeline_mode = #tpu.pipeline_mode<synchronous>, transform_indices = @transform_4, window_bounds = array<i64: 4, 1>}, {transform_indices = @transform_5, window_bounds = array<i64: 1, 4, 256>}]} {
    %c0 = arith.constant 0 : index
    %c0_0 = arith.constant 0 : index
    %c0_1 = arith.constant 0 : index
    %0 = vector.load %arg1[%c0, %c0_0, %c0_1] : memref<1x4x256xf32, #tpu.memory_space<vmem>>, vector<1x4x256xf32>
    %1 = vector.shape_cast %0 : vector<1x4x256xf32> to vector<4x256xf32>
    %cst = arith.constant 0.000000e+00 : f32
    %2 = vector.broadcast %cst : f32 to vector<4x128xf32>
    %c0_2 = arith.constant 0 : index
    %c0_3 = arith.constant 0 : index
    %3 = vector.load %arg7[%c0_2, %c0_3] : memref<4x512xf32, #tpu.memory_space<vmem>>, vector<4x128xf32>
    tpu.vector_store %arg7[%c0_2, %c0_3], %2 {strides = array<i32>} : memref<4x512xf32, #tpu.memory_space<vmem>>, vector<4x128xf32>,
    %c0_4 = arith.constant 0 : index
    %c384 = arith.constant 384 : index
    %4 = vector.load %arg7[%c0_4, %c384] : memref<4x512xf32, #tpu.memory_space<vmem>>, vector<4x128xf32>
    tpu.vector_store %arg7[%c0_4, %c384], %2 {strides = array<i32>} : memref<4x512xf32, #tpu.memory_space<vmem>>, vector<4x128xf32>,
    %5 = tpu.iota {dimensions = array<i32: 1>} : vector<4x256xi32>
    %c15_i32 = arith.constant 15 : i32
    %6 = vector.broadcast %c15_i32 : i32 to vector<4x256xi32>
    %7 = arith.andi %5, %6 : vector<4x256xi32>
    %c1_i32 = arith.constant 1 : i32
    %8 = vector.broadcast %c1_i32 : i32 to vector<4x256xi32>
    %9 = arith.cmpi sge, %7, %8 : vector<4x256xi32>
    %c14_i32 = arith.constant 14 : i32
    %10 = vector.broadcast %c14_i32 : i32 to vector<4x256xi32>
    %11 = arith.cmpi sle, %7, %10 : vector<4x256xi32>
    %c0_5 = arith.constant 0 : index
    %c128 = arith.constant 128 : index
    %12 = vector.load %arg7[%c0_5, %c128] : memref<4x512xf32, #tpu.memory_space<vmem>>, vector<4x256xf32>
    tpu.vector_store %arg7[%c0_5, %c128], %1 {strides = array<i32>} : memref<4x512xf32, #tpu.memory_space<vmem>>, vector<4x256xf32>,
    %c0_6 = arith.constant 0 : index
    %c111 = arith.constant 111 : index
    %13 = vector.load %arg7[%c0_6, %c111] : memref<4x512xf32, #tpu.memory_space<vmem>>, vector<4x256xf32>
    %cst_7 = arith.constant 0.000000e+00 : f32
    %14 = vector.broadcast %cst_7 : f32 to vector<4x256xf32>
    %15 = arith.select %9, %13, %14 : vector<4x256xi1>, vector<4x256xf32>
    %c0_8 = arith.constant 0 : index
    %c0_9 = arith.constant 0 : index
    %16 = vector.load %arg8[%c0_8, %c0_9] : memref<36x256xf32, #tpu.memory_space<vmem>>, vector<4x256xf32>
    tpu.vector_store %arg8[%c0_8, %c0_9], %15 {strides = array<i32>} : memref<36x256xf32, #tpu.memory_space<vmem>>, vector<4x256xf32>,
    %c0_10 = arith.constant 0 : index
    %c112 = arith.constant 112 : index
    %17 = vector.load %arg7[%c0_10, %c112] : memref<4x512xf32, #tpu.memory_space<vmem>>, vector<4x256xf32>
    %c4 = arith.constant 4 : index
    %c0_11 = arith.constant 0 : index
    %18 = vector.load %arg8[%c4, %c0_11] : memref<36x256xf32, #tpu.memory_space<vmem>>, vector<4x256xf32>
    tpu.vector_store %arg8[%c4, %c0_11], %17 {strides = array<i32>} : memref<36x256xf32, #tpu.memory_space<vmem>>, vector<4x256xf32>,
    %c0_12 = arith.constant 0 : index
    %c113 = arith.constant 113 : index
    %19 = vector.load %arg7[%c0_12, %c113] : memref<4x512xf32, #tpu.memory_space<vmem>>, vector<4x256xf32>
    %cst_13 = arith.constant 0.000000e+00 : f32
    %20 = vector.broadcast %cst_13 : f32 to vector<4x256xf32>
    %21 = arith.select %11, %19, %20 : vector<4x256xi1>, vector<4x256xf32>
    %c8 = arith.constant 8 : index
    %c0_14 = arith.constant 0 : index
    %22 = vector.load %arg8[%c8, %c0_14] : memref<36x256xf32, #tpu.memory_space<vmem>>, vector<4x256xf32>
    tpu.vector_store %arg8[%c8, %c0_14], %21 {strides = array<i32>} : memref<36x256xf32, #tpu.memory_space<vmem>>, vector<4x256xf32>,
    %c0_15 = arith.constant 0 : index
    %c127 = arith.constant 127 : index
    %23 = vector.load %arg7[%c0_15, %c127] : memref<4x512xf32, #tpu.memory_space<vmem>>, vector<4x256xf32>
    %cst_16 = arith.constant 0.000000e+00 : f32
    %24 = vector.broadcast %cst_16 : f32 to vector<4x256xf32>
    %25 = arith.select %9, %23, %24 : vector<4x256xi1>, vector<4x256xf32>
    %c12 = arith.constant 12 : index
    %c0_17 = arith.constant 0 : index
    %26 = vector.load %arg8[%c12, %c0_17] : memref<36x256xf32, #tpu.memory_space<vmem>>, vector<4x256xf32>
    tpu.vector_store %arg8[%c12, %c0_17], %25 {strides = array<i32>} : memref<36x256xf32, #tpu.memory_space<vmem>>, vector<4x256xf32>,
    %c0_18 = arith.constant 0 : index
    %c128_19 = arith.constant 128 : index
    %27 = vector.load %arg7[%c0_18, %c128_19] : memref<4x512xf32, #tpu.memory_space<vmem>>, vector<4x256xf32>
    %c16 = arith.constant 16 : index
    %c0_20 = arith.constant 0 : index
    %28 = vector.load %arg8[%c16, %c0_20] : memref<36x256xf32, #tpu.memory_space<vmem>>, vector<4x256xf32>
    tpu.vector_store %arg8[%c16, %c0_20], %27 {strides = array<i32>} : memref<36x256xf32, #tpu.memory_space<vmem>>, vector<4x256xf32>,
    %c0_21 = arith.constant 0 : index
    %c129 = arith.constant 129 : index
    %29 = vector.load %arg7[%c0_21, %c129] : memref<4x512xf32, #tpu.memory_space<vmem>>, vector<4x256xf32>
    %cst_22 = arith.constant 0.000000e+00 : f32
    %30 = vector.broadcast %cst_22 : f32 to vector<4x256xf32>
    %31 = arith.select %11, %29, %30 : vector<4x256xi1>, vector<4x256xf32>
    %c20 = arith.constant 20 : index
    %c0_23 = arith.constant 0 : index
    %32 = vector.load %arg8[%c20, %c0_23] : memref<36x256xf32, #tpu.memory_space<vmem>>, vector<4x256xf32>
    tpu.vector_store %arg8[%c20, %c0_23], %31 {strides = array<i32>} : memref<36x256xf32, #tpu.memory_space<vmem>>, vector<4x256xf32>,
    %c0_24 = arith.constant 0 : index
    %c143 = arith.constant 143 : index
    %33 = vector.load %arg7[%c0_24, %c143] : memref<4x512xf32, #tpu.memory_space<vmem>>, vector<4x256xf32>
    %cst_25 = arith.constant 0.000000e+00 : f32
    %34 = vector.broadcast %cst_25 : f32 to vector<4x256xf32>
    %35 = arith.select %9, %33, %34 : vector<4x256xi1>, vector<4x256xf32>
    %c24 = arith.constant 24 : index
    %c0_26 = arith.constant 0 : index
    %36 = vector.load %arg8[%c24, %c0_26] : memref<36x256xf32, #tpu.memory_space<vmem>>, vector<4x256xf32>
    tpu.vector_store %arg8[%c24, %c0_26], %35 {strides = array<i32>} : memref<36x256xf32, #tpu.memory_space<vmem>>, vector<4x256xf32>,
    %c0_27 = arith.constant 0 : index
    %c144 = arith.constant 144 : index
    %37 = vector.load %arg7[%c0_27, %c144] : memref<4x512xf32, #tpu.memory_space<vmem>>, vector<4x256xf32>
    %c28 = arith.constant 28 : index
    %c0_28 = arith.constant 0 : index
    %38 = vector.load %arg8[%c28, %c0_28] : memref<36x256xf32, #tpu.memory_space<vmem>>, vector<4x256xf32>
    tpu.vector_store %arg8[%c28, %c0_28], %37 {strides = array<i32>} : memref<36x256xf32, #tpu.memory_space<vmem>>, vector<4x256xf32>,
    %c0_29 = arith.constant 0 : index
    %c145 = arith.constant 145 : index
    %39 = vector.load %arg7[%c0_29, %c145] : memref<4x512xf32, #tpu.memory_space<vmem>>, vector<4x256xf32>
    %cst_30 = arith.constant 0.000000e+00 : f32
    %40 = vector.broadcast %cst_30 : f32 to vector<4x256xf32>
    %41 = arith.select %11, %39, %40 : vector<4x256xi1>, vector<4x256xf32>
    %c32 = arith.constant 32 : index
    %c0_31 = arith.constant 0 : index
    %42 = vector.load %arg8[%c32, %c0_31] : memref<36x256xf32, #tpu.memory_space<vmem>>, vector<4x256xf32>
    tpu.vector_store %arg8[%c32, %c0_31], %41 {strides = array<i32>} : memref<36x256xf32, #tpu.memory_space<vmem>>, vector<4x256xf32>,
    %c0_32 = arith.constant 0 : index
    %c0_33 = arith.constant 0 : index
    %43 = vector.load %arg2[%c0_32, %c0_33] : memref<4x36xf32, #tpu.memory_space<vmem>>, vector<4x36xf32>
    %c0_34 = arith.constant 0 : index
    %c0_35 = arith.constant 0 : index
    %44 = vector.load %arg8[%c0_34, %c0_35] : memref<36x256xf32, #tpu.memory_space<vmem>>, vector<36x256xf32>
    %cst_36 = arith.constant dense<0.000000e+00> : vector<4x256xf32>
    %45 = tpu.matmul %43, %44, %cst_36 {dimension_numbers = #tpu.dot_dimension_numbers<[1], [0], [0], [1], [0, 0, 1, 1], [], []>} : vector<4x36xf32>, vector<36x256xf32>, vector<4x256xf32> -> vector<4x256xf32>
    %c0_37 = arith.constant 0 : index
    %c0_38 = arith.constant 0 : index
    %46 = vector.load %arg3[%c0_37, %c0_38] : memref<4x1xf32, #tpu.memory_space<vmem>>, vector<4x1xf32>
    %47 = vector.broadcast %46 : vector<4x1xf32> to vector<4x256xf32>
    %48 = arith.addf %45, %47 : vector<4x256xf32>
    %cst_39 = arith.constant dense<0.000000e+00> : vector<4xf32>
    %49 = vector.multi_reduction <add>, %48, %cst_39 [1] : vector<4x256xf32> to vector<4xf32>
    %50 = vector.shape_cast %49 : vector<4xf32> to vector<4x1xf32>
    %cst_40 = arith.constant 2.560000e+02 : f32
    %51 = vector.broadcast %cst_40 : f32 to vector<4x1xf32>
    %52 = arith.divf %50, %51 : vector<4x1xf32>
    %53 = vector.broadcast %52 : vector<4x1xf32> to vector<4x256xf32>
    %54 = arith.subf %48, %53 : vector<4x256xf32>
    %55 = arith.mulf %54, %54 : vector<4x256xf32>
    %cst_41 = arith.constant dense<0.000000e+00> : vector<4xf32>
    %56 = vector.multi_reduction <add>, %55, %cst_41 [1] : vector<4x256xf32> to vector<4xf32>
    %57 = vector.shape_cast %56 : vector<4xf32> to vector<4x1xf32>
    %cst_42 = arith.constant 2.560000e+02 : f32
    %58 = vector.broadcast %cst_42 : f32 to vector<4x1xf32>
    %59 = arith.divf %57, %58 : vector<4x1xf32>
    %60 = vector.broadcast %52 : vector<4x1xf32> to vector<4x256xf32>
    %61 = arith.subf %48, %60 : vector<4x256xf32>
    %cst_43 = arith.constant 9.99999974E-6 : f32
    %62 = vector.broadcast %cst_43 : f32 to vector<4x1xf32>
    %63 = arith.addf %59, %62 : vector<4x1xf32>
    %64 = math.rsqrt %63 : vector<4x1xf32>
    %65 = vector.broadcast %64 : vector<4x1xf32> to vector<4x256xf32>
    %66 = arith.mulf %61, %65 : vector<4x256xf32>
    %cst_44 = arith.constant 0.000000e+00 : f32
    %67 = vector.broadcast %cst_44 : f32 to vector<4x256xf32>
    %68 = arith.cmpf ogt, %66, %67 : vector<4x256xf32>
    %cst_45 = arith.constant 2.000000e-01 : f32
    %69 = vector.broadcast %cst_45 : f32 to vector<4x256xf32>
    %70 = arith.mulf %69, %66 : vector<4x256xf32>
    %71 = arith.select %68, %66, %70 : vector<4x256xi1>, vector<4x256xf32>
    %c0_46 = arith.constant 0 : index
    %c128_47 = arith.constant 128 : index
    %72 = vector.load %arg7[%c0_46, %c128_47] : memref<4x512xf32, #tpu.memory_space<vmem>>, vector<4x256xf32>
    tpu.vector_store %arg7[%c0_46, %c128_47], %71 {strides = array<i32>} : memref<4x512xf32, #tpu.memory_space<vmem>>, vector<4x256xf32>,
    %c0_48 = arith.constant 0 : index
    %c111_49 = arith.constant 111 : index
    %73 = vector.load %arg7[%c0_48, %c111_49] : memref<4x512xf32, #tpu.memory_space<vmem>>, vector<4x256xf32>
    %cst_50 = arith.constant 0.000000e+00 : f32
    %74 = vector.broadcast %cst_50 : f32 to vector<4x256xf32>
    %75 = arith.select %9, %73, %74 : vector<4x256xi1>, vector<4x256xf32>
    %c0_51 = arith.constant 0 : index
    %c0_52 = arith.constant 0 : index
    %76 = vector.load %arg8[%c0_51, %c0_52] : memref<36x256xf32, #tpu.memory_space<vmem>>, vector<4x256xf32>
    tpu.vector_store %arg8[%c0_51, %c0_52], %75 {strides = array<i32>} : memref<36x256xf32, #tpu.memory_space<vmem>>, vector<4x256xf32>,
    %c0_53 = arith.constant 0 : index
    %c112_54 = arith.constant 112 : index
    %77 = vector.load %arg7[%c0_53, %c112_54] : memref<4x512xf32, #tpu.memory_space<vmem>>, vector<4x256xf32>
    %c4_55 = arith.constant 4 : index
    %c0_56 = arith.constant 0 : index
    %78 = vector.load %arg8[%c4_55, %c0_56] : memref<36x256xf32, #tpu.memory_space<vmem>>, vector<4x256xf32>
    tpu.vector_store %arg8[%c4_55, %c0_56], %77 {strides = array<i32>} : memref<36x256xf32, #tpu.memory_space<vmem>>, vector<4x256xf32>,
    %c0_57 = arith.constant 0 : index
    %c113_58 = arith.constant 113 : index
    %79 = vector.load %arg7[%c0_57, %c113_58] : memref<4x512xf32, #tpu.memory_space<vmem>>, vector<4x256xf32>
    %cst_59 = arith.constant 0.000000e+00 : f32
    %80 = vector.broadcast %cst_59 : f32 to vector<4x256xf32>
    %81 = arith.select %11, %79, %80 : vector<4x256xi1>, vector<4x256xf32>
    %c8_60 = arith.constant 8 : index
    %c0_61 = arith.constant 0 : index
    %82 = vector.load %arg8[%c8_60, %c0_61] : memref<36x256xf32, #tpu.memory_space<vmem>>, vector<4x256xf32>
    tpu.vector_store %arg8[%c8_60, %c0_61], %81 {strides = array<i32>} : memref<36x256xf32, #tpu.memory_space<vmem>>, vector<4x256xf32>,
    %c0_62 = arith.constant 0 : index
    %c127_63 = arith.constant 127 : index
    %83 = vector.load %arg7[%c0_62, %c127_63] : memref<4x512xf32, #tpu.memory_space<vmem>>, vector<4x256xf32>
    %cst_64 = arith.constant 0.000000e+00 : f32
    %84 = vector.broadcast %cst_64 : f32 to vector<4x256xf32>
    %85 = arith.select %9, %83, %84 : vector<4x256xi1>, vector<4x256xf32>
    %c12_65 = arith.constant 12 : index
    %c0_66 = arith.constant 0 : index
    %86 = vector.load %arg8[%c12_65, %c0_66] : memref<36x256xf32, #tpu.memory_space<vmem>>, vector<4x256xf32>
    tpu.vector_store %arg8[%c12_65, %c0_66], %85 {strides = array<i32>} : memref<36x256xf32, #tpu.memory_space<vmem>>, vector<4x256xf32>,
    %c0_67 = arith.constant 0 : index
    %c128_68 = arith.constant 128 : index
    %87 = vector.load %arg7[%c0_67, %c128_68] : memref<4x512xf32, #tpu.memory_space<vmem>>, vector<4x256xf32>
    %c16_69 = arith.constant 16 : index
    %c0_70 = arith.constant 0 : index
    %88 = vector.load %arg8[%c16_69, %c0_70] : memref<36x256xf32, #tpu.memory_space<vmem>>, vector<4x256xf32>
    tpu.vector_store %arg8[%c16_69, %c0_70], %87 {strides = array<i32>} : memref<36x256xf32, #tpu.memory_space<vmem>>, vector<4x256xf32>,
    %c0_71 = arith.constant 0 : index
    %c129_72 = arith.constant 129 : index
    %89 = vector.load %arg7[%c0_71, %c129_72] : memref<4x512xf32, #tpu.memory_space<vmem>>, vector<4x256xf32>
    %cst_73 = arith.constant 0.000000e+00 : f32
    %90 = vector.broadcast %cst_73 : f32 to vector<4x256xf32>
    %91 = arith.select %11, %89, %90 : vector<4x256xi1>, vector<4x256xf32>
    %c20_74 = arith.constant 20 : index
    %c0_75 = arith.constant 0 : index
    %92 = vector.load %arg8[%c20_74, %c0_75] : memref<36x256xf32, #tpu.memory_space<vmem>>, vector<4x256xf32>
    tpu.vector_store %arg8[%c20_74, %c0_75], %91 {strides = array<i32>} : memref<36x256xf32, #tpu.memory_space<vmem>>, vector<4x256xf32>,
    %c0_76 = arith.constant 0 : index
    %c143_77 = arith.constant 143 : index
    %93 = vector.load %arg7[%c0_76, %c143_77] : memref<4x512xf32, #tpu.memory_space<vmem>>, vector<4x256xf32>
    %cst_78 = arith.constant 0.000000e+00 : f32
    %94 = vector.broadcast %cst_78 : f32 to vector<4x256xf32>
    %95 = arith.select %9, %93, %94 : vector<4x256xi1>, vector<4x256xf32>
    %c24_79 = arith.constant 24 : index
    %c0_80 = arith.constant 0 : index
    %96 = vector.load %arg8[%c24_79, %c0_80] : memref<36x256xf32, #tpu.memory_space<vmem>>, vector<4x256xf32>
    tpu.vector_store %arg8[%c24_79, %c0_80], %95 {strides = array<i32>} : memref<36x256xf32, #tpu.memory_space<vmem>>, vector<4x256xf32>,
    %c0_81 = arith.constant 0 : index
    %c144_82 = arith.constant 144 : index
    %97 = vector.load %arg7[%c0_81, %c144_82] : memref<4x512xf32, #tpu.memory_space<vmem>>, vector<4x256xf32>
    %c28_83 = arith.constant 28 : index
    %c0_84 = arith.constant 0 : index
    %98 = vector.load %arg8[%c28_83, %c0_84] : memref<36x256xf32, #tpu.memory_space<vmem>>, vector<4x256xf32>
    tpu.vector_store %arg8[%c28_83, %c0_84], %97 {strides = array<i32>} : memref<36x256xf32, #tpu.memory_space<vmem>>, vector<4x256xf32>,
    %c0_85 = arith.constant 0 : index
    %c145_86 = arith.constant 145 : index
    %99 = vector.load %arg7[%c0_85, %c145_86] : memref<4x512xf32, #tpu.memory_space<vmem>>, vector<4x256xf32>
    %cst_87 = arith.constant 0.000000e+00 : f32
    %100 = vector.broadcast %cst_87 : f32 to vector<4x256xf32>
    %101 = arith.select %11, %99, %100 : vector<4x256xi1>, vector<4x256xf32>
    %c32_88 = arith.constant 32 : index
    %c0_89 = arith.constant 0 : index
    %102 = vector.load %arg8[%c32_88, %c0_89] : memref<36x256xf32, #tpu.memory_space<vmem>>, vector<4x256xf32>
    tpu.vector_store %arg8[%c32_88, %c0_89], %101 {strides = array<i32>} : memref<36x256xf32, #tpu.memory_space<vmem>>, vector<4x256xf32>,
    %c0_90 = arith.constant 0 : index
    %c0_91 = arith.constant 0 : index
    %103 = vector.load %arg4[%c0_90, %c0_91] : memref<4x36xf32, #tpu.memory_space<vmem>>, vector<4x36xf32>
    %c0_92 = arith.constant 0 : index
    %c0_93 = arith.constant 0 : index
    %104 = vector.load %arg8[%c0_92, %c0_93] : memref<36x256xf32, #tpu.memory_space<vmem>>, vector<36x256xf32>
    %cst_94 = arith.constant dense<0.000000e+00> : vector<4x256xf32>
    %105 = tpu.matmul %103, %104, %cst_94 {dimension_numbers = #tpu.dot_dimension_numbers<[1], [0], [0], [1], [0, 0, 1, 1], [], []>} : vector<4x36xf32>, vector<36x256xf32>, vector<4x256xf32> -> vector<4x256xf32>
    %c0_95 = arith.constant 0 : index
    %c0_96 = arith.constant 0 : index
    %106 = vector.load %arg5[%c0_95, %c0_96] : memref<4x1xf32, #tpu.memory_space<vmem>>, vector<4x1xf32>
    %107 = vector.broadcast %106 : vector<4x1xf32> to vector<4x256xf32>
    %108 = arith.addf %105, %107 : vector<4x256xf32>
    %cst_97 = arith.constant dense<0.000000e+00> : vector<4xf32>
    %109 = vector.multi_reduction <add>, %108, %cst_97 [1] : vector<4x256xf32> to vector<4xf32>
    %110 = vector.shape_cast %109 : vector<4xf32> to vector<4x1xf32>
    %cst_98 = arith.constant 2.560000e+02 : f32
    %111 = vector.broadcast %cst_98 : f32 to vector<4x1xf32>
    %112 = arith.divf %110, %111 : vector<4x1xf32>
    %113 = vector.broadcast %112 : vector<4x1xf32> to vector<4x256xf32>
    %114 = arith.subf %108, %113 : vector<4x256xf32>
    %115 = arith.mulf %114, %114 : vector<4x256xf32>
    %cst_99 = arith.constant dense<0.000000e+00> : vector<4xf32>
    %116 = vector.multi_reduction <add>, %115, %cst_99 [1] : vector<4x256xf32> to vector<4xf32>
    %117 = vector.shape_cast %116 : vector<4xf32> to vector<4x1xf32>
    %cst_100 = arith.constant 2.560000e+02 : f32
    %118 = vector.broadcast %cst_100 : f32 to vector<4x1xf32>
    %119 = arith.divf %117, %118 : vector<4x1xf32>
    %120 = vector.broadcast %112 : vector<4x1xf32> to vector<4x256xf32>
    %121 = arith.subf %108, %120 : vector<4x256xf32>
    %cst_101 = arith.constant 9.99999974E-6 : f32
    %122 = vector.broadcast %cst_101 : f32 to vector<4x1xf32>
    %123 = arith.addf %119, %122 : vector<4x1xf32>
    %124 = math.rsqrt %123 : vector<4x1xf32>
    %125 = vector.broadcast %124 : vector<4x1xf32> to vector<4x256xf32>
    %126 = arith.mulf %121, %125 : vector<4x256xf32>
    %127 = arith.addf %126, %1 : vector<4x256xf32>
    %cst_102 = arith.constant 0.000000e+00 : f32
    %128 = vector.broadcast %cst_102 : f32 to vector<4x256xf32>
    %129 = arith.cmpf ogt, %127, %128 : vector<4x256xf32>
    %cst_103 = arith.constant 2.000000e-01 : f32
    %130 = vector.broadcast %cst_103 : f32 to vector<4x256xf32>
    %131 = arith.mulf %130, %127 : vector<4x256xf32>
    %132 = arith.select %129, %127, %131 : vector<4x256xi1>, vector<4x256xf32>
    %c0_104 = arith.constant 0 : index
    %c0_105 = arith.constant 0 : index
    %c0_106 = arith.constant 0 : index
    %133 = vector.load %arg6[%c0_104, %c0_105, %c0_106] : memref<1x4x256xf32, #tpu.memory_space<vmem>>, vector<1x4x256xf32>
    %134 = vector.shape_cast %133 : vector<1x4x256xf32> to vector<4x256xf32>
    %135 = vector.shape_cast %132 : vector<4x256xf32> to vector<1x4x256xf32>
    tpu.vector_store %arg6[%c0_104, %c0_105, %c0_106], %135 {strides = array<i32>} : memref<1x4x256xf32, #tpu.memory_space<vmem>>, vector<1x4x256xf32>,
    return
  }
  func.func @transform_0(%arg0: i32) -> (i32, i32, i32) {
    %c0_i32 = arith.constant 0 : i32
    %c0_i32_0 = arith.constant 0 : i32
    %c0_i32_1 = arith.constant 0 : i32
    return %arg0, %c0_i32, %c0_i32_0 : i32, i32, i32
  }
  func.func @transform_1(%arg0: i32) -> (i32, i32) {
    %c0_i32 = arith.constant 0 : i32
    %c0_i32_0 = arith.constant 0 : i32
    %c0_i32_1 = arith.constant 0 : i32
    return %c0_i32, %c0_i32_0 : i32, i32
  }
  func.func @transform_2(%arg0: i32) -> (i32, i32) {
    %c0_i32 = arith.constant 0 : i32
    %c0_i32_0 = arith.constant 0 : i32
    %c0_i32_1 = arith.constant 0 : i32
    return %c0_i32, %c0_i32_0 : i32, i32
  }
  func.func @transform_3(%arg0: i32) -> (i32, i32) {
    %c0_i32 = arith.constant 0 : i32
    %c0_i32_0 = arith.constant 0 : i32
    %c0_i32_1 = arith.constant 0 : i32
    return %c0_i32, %c0_i32_0 : i32, i32
  }
  func.func @transform_4(%arg0: i32) -> (i32, i32) {
    %c0_i32 = arith.constant 0 : i32
    %c0_i32_0 = arith.constant 0 : i32
    %c0_i32_1 = arith.constant 0 : i32
    return %c0_i32, %c0_i32_0 : i32, i32
  }
  func.func @transform_5(%arg0: i32) -> (i32, i32, i32) {
    %c0_i32 = arith.constant 0 : i32
    %c0_i32_0 = arith.constant 0 : i32
    %c0_i32_1 = arith.constant 0 : i32
    return %arg0, %c0_i32, %c0_i32_0 : i32, i32, i32
  }
}

</mosaic_0001>

<bundles_post_ra>
// kernel: tpu_custom_call.1
= control target key start
LH: loop header
LB: loop body
LE: loop exit
PB: predicated region body
PF: predicated region fallthrough
CT: control target
= control target key end

     0   :  { %10 = vsyncpa [#allocation5], 0  ;;  %s1553_s0 = inlined_call_operand.hbm [shape: f32[2,4,256], index: 0, kind: input, shape index: {}]   ;;  %s1554_s1 = inlined_call_operand.vmem [shape: f32[4,36], index: 1, kind: input, shape index: {}]   ;;  %s1555_s2 = inlined_call_operand.vmem [shape: f32[4,1], index: 2, kind: input, shape index: {}]   ;;  %s1556_s3 = inlined_call_operand.vmem [shape: f32[4,36], index: 3, kind: input, shape index: {}]   ;;  %s1557_s4 = inlined_call_operand.vmem [shape: f32[4,1], index: 4, kind: input, shape index: {}]   ;;  %s1558_s5 = inlined_call_operand.hbm [shape: f32[2,4,256], index: 5, kind: output, shape index: {}]  }
   0x1   :  { %12 = vsyncpa [#allocation5 + $0x1], 0 }
   0x2   :  { %13 = vsyncpa [#allocation6], 0 }
   0x3   :  { %15 = vsyncpa [#allocation6 + $0x1], 0  ;;  %s1198_s18 = smov 0   ;;  %s1200_s19 = smov 0  }
   0x4   :  { %s1202_s20 = smov 0   ;;  %s1204_s21 = smov 0  }
   0x5 LB: > { %s1219_s22 = sadd.s32 4294967295, %s1154_s21   ;;  %s947_s23 = sadd.s32 4294967294, %s1154_s21   ;;  %s1154_s21 = sphi %s1204_s21, %s1581_s21   ;;  %s1150_s20 = sphi %s1202_s20, %s1580_s20   ;;  %s1146_s19 = sphi %s1200_s19, %s1579_s19   ;;  %s1142_s18 = sphi %s1198_s18, %s1578_s18  }
   0x6   : > { %s1223_s24 = sadd.s32 1, %s1154_s21   ;;  %s28_s25 = sadd.s32 1, %s1150_s20 }
   0x7   : > { %s25_s26 = ssub.s32 %s1154_s21, %s1223_s24  ;;  %p35_p0 = scmp.ne.s32.totalorder %s1150_s20, %s1146_s19 }
   0x8   : > { %p26_p1 = scmp.eq.s32.totalorder %s25_s26, 0  ;;  %p36_p2 = scmp.eq.s32.totalorder %s1154_s21, 0 }
   0x9   : > { %p41_p3 = scmp.ne.s32.totalorder %s1146_s19, %s1142_s18  ;;  %p42_p4 = scmp.eq.s32.totalorder %s1219_s22, 0 }
   0xa   : > { %s1235_s27 = scalar_select %p26_p1, %s1150_s20, %s28_s25  }
   0xb   : > { %p1237_p5 = por %p36_p2, %p35_p0  ;;  %p1241_p6 = por %p42_p4, %p41_p3 }
   0xc   : > { %p149_p7 = scmp.eq.s32.totalorder %s1219_s22, 1  ;;  %p155_p8 = scmp.eq.s32.totalorder %s947_s23, 1 }
   0xd   : > { %p997_p10 = scmp.lt.s32.totalorder %s1154_s21, 2  ;;  %s187_s7 = sand.u32 1, %s1150_s20  }
   0xe   : > { %p1248_p11 = por %p149_p7, %p35_p0  ;;  %p1252_p12 = por %p155_p8, %p41_p3 }
   0xf   : > { %s967_s8 = sshll.u32 %s1154_s21, 7  ;;  %s950_s9 = sshll.u32 %s187_s7, 3 }
  0x10   : > { %s1562_s30 = scalar_select %p1248_p11, 1, 0 }
  0x11   : > { %s1563_s6 = scalar_select %p1252_p12, 1, 0 }
  0x12   : > { %s1261_s12 = scalar_lea.hbm %s1553_s0, %s967_s8  ;;  %s191_s13 = scalar_lea.vmem [#allocation4], %s950_s9 }
  0x13   : > { %s199_s14 = sshll.u32 %s191_s13, 4  ;;  %p1265_p13 = pnand %p997_p10, %p1237_p5  ;;  %s1269_s14 = int_to_ptr.vmem [resolvable:$true] %s199_s14 }
  0x14   : > { %s188_s16 = scalar_lea.sflag [#allocation5], %s187_s7  ;;  %s1058_s17 = scalar_lea.hbm %s1261_s12, 128 }
  0x15   : > { %p1059_p2 = scmp.ne.s32.totalorder %s1261_s12, %s1058_s17  ;;  %p1060_p3 = pneg %p1265_p13 }
  0x16   : > { %s1063_s26 = scalar_lea.hbm %s1553_s0, 256  ;;  %p1064_p5 = scmp.lt.u32.totalorder %s1261_s12, %s1553_s0 }
  0x17   : > { %p1061_p4 = pnand %p1060_p3, %p1059_p2  ;;  %p1065_p8 = scmp.lt.u32.totalorder %s1063_s26, %s1058_s17 }
  0x18   : > { %p1067_p9 = scmp.lt.u32.totalorder %s1058_s17, %s1261_s12 }
  0x19   : > { %p1062_p7 = pneg %p1061_p4  ;;  %p1066_p10 = por %p1065_p8, %p1064_p5 }
  0x1b   : > { %p1068_p0 = por %p1067_p9, %p1066_p10 }
  0x1d   : > { %p1069_p1 = pnand %p1068_p0, %p1062_p7 }
  0x1f   : > { %1072 = shalt.err (!%p1069_p1)
}
  0x20   : > { %s1073_s7 = scalar_lea.vmem %s1269_s14, 128  ;;  %s1156_s9 = smov [#allocation4]  }
  0x21   : > { %p1074_p2 = scmp.ne.s32.totalorder %s1269_s14, %s1073_s7  ;;  %s1078_s10 = sshll.u32 %s1156_s9, 4  ;;  %s1079_s10 = int_to_ptr.vmem [resolvable:$false] %s1078_s10 }
  0x22   : > { %s1080_s11 = scalar_lea.vmem %s1079_s10, 256  ;;  %p1081_p11 = scmp.lt.s32.totalorder %s1269_s14, %s1079_s10 }
  0x23   : > { %p1076_p4 = pnand %p1074_p2, %p1060_p3  ;;  %p1082_p5 = scmp.lt.s32.totalorder %s1080_s11, %s1073_s7 }
  0x25   : > { %p1077_p12 = pneg %p1076_p4  ;;  %p1083_p8 = por %p1082_p5, %p1081_p11 }
  0x27   : > { %p1084_p9 = pnand %p1083_p8, %p1077_p12 }
  0x29   : > { %1087 = shalt.err (!%p1084_p9)
}
  0x2a   : > { %992 = dma.hbm_to_vmem [thread:$0]  (!%p1265_p13), %s1261_s12, 128, %s1269_s14, %s188_s16  }
  0x2b   : > { %p1565_p0 = scmp.lt.s32.totalorder %s1154_s21, 3  ;;  %p1566_p1 = scmp.ge.s32.totalorder %s1154_s21, 1 }
  0x2d   : > { %p205_p3 = pnand %p1566_p1, %p1565_p0 }
  0x2e   : > { %s1303_s13 = sand.u32 (!%p205_p3), 1, %s1146_s19  }
  0x2f   : > { %208 = sbr.rel (%p205_p3) target bundleno = 1492 (0x5d4), region = 40  ;;  %s954_s17 = sshll.u32 (!%p205_p3), %s1303_s13, 3 }
  0x30   : > { %s211_s23 = scalar_lea.sflag (!%p205_p3), [#allocation5], %s1303_s13  ;;  %s214_s15 = scalar_lea.vmem (!%p205_p3), [#allocation4], %s954_s17 }
  0x36   : > { %1133 = dma.done.wait (%p1241_p6), %s211_s23, 128  }
  0x37   : > { %1135 = vsyncadd (%p1241_p6), %s211_s23, 4294967168  ;;  %v1157_v0 = vmov 0.0   ;;  %v1313_v1 = vld [vmem:[%s214_s15] sm:$0xff]  ;;  %s1158_s29 = smov 1   ;;  %s1159_s12 = smov 17   ;;  %v1166_v15 = vmov 0   ;;  %v244_v17 = vlaneseq }
  0x38   : > { %242 = vst [vmem:[#allocation2] sm:$0xf] %v1157_v0  ;;  %243 = vst [vmem:[#allocation2 + $0xc] sm:$0xf] %v1157_v0  ;;  %522 = vmatprep.mubr.f32.mxu0 %v1157_v0  ;;  %819 = vmatprep.mubr.f32.mxu1 %v1157_v0  ;;  %v1318_v2 = vcombine.high %v1313_v1, %v1313_v1  ;;  %s1160_s14 = smov 15   ;;  %s1161_s16 = smov 16   ;;  %v395_v13 = vcombine.low %v1313_v1, %v1313_v1 }
  0x39   : > { %253 = vst [vmem:[#allocation2 + $0x4] sm:$0xff] %v1313_v1  ;;  %343 = vst [vmem:[#allocation3 + $0x20] sm:$0xf] %v1313_v1  ;;  %s1162_s25 = smov 127   ;;  %s1163_s26 = smov 113   ;;  %1041 = vset.pattern.permute.xlu0 %v1166_v15  ;;  %v245_v18 = vand.u32 127, %v244_v17 }
  0x3a   : > { %344 = vst [vmem:[#allocation3 + $0x28] sm:$0xf] %v1318_v2  ;;  %s1164_s28 = smov 112   ;;  %s1165_s8 = smov 111   ;;  %v441_v16 = vld [vmem:[%s1555_s2] sm:$0xf] }
  0x3b   : > { %v246_v19 = vadd.s32 128, %v245_v18  ;;  %v247_v22 = vand.u32 15, %v245_v18  ;;  %vm265_vm0 = vcmask 138240   ;;  %vm304_vm3 = vcmask 121856   ;;  %p1575_p11 = scmp.ne.s32.totalorder %s1562_s30, 0  ;;  %s1167_s7 = smov [#allocation7]  }
  0x3c   : > { %vm324_vm5 = vcmask 7168   ;;  %vm286_vm6 = vcmask 130048   ;;  %vm356_vm8 = vcmask 1039360   ;;  %vm382_vm9 = vcmask 924672   ;;  %s1092_s9 = sshll.u32 %s1167_s7, 4  ;;  %s1093_s9 = int_to_ptr.vmem [resolvable:$false] %s1092_s9 }
  0x3d   : > { %v248_v23 = vand.u32 15, %v246_v19  ;;  %vm1358_vm1 = vcmp.ge.s32.totalorder %v247_v22, 1  ;;  %vm1386_vm7 = vcmp.le.s32.totalorder %v247_v22, 14  ;;  %vm403_vm10 = vcmask 916480   ;;  %s1094_s10 = scalar_lea.vmem %s1093_s9, 256 }
  0x3e   : > { %vm421_vm11 = vcmask 908288   ;;  %vm451_vm12 = vcmask 1043456   ;;  %vm447_vm13 = vcmask 293888  }
  0x3f   : > { %v346_v10 = vld [vmem:[#allocation2 + $0xc] sm:$0xf]  ;;  %vm1362_vm2 = vcmp.ge.s32.totalorder %v248_v23, 1  ;;  %vm1372_vm4 = vcmp.le.s32.totalorder %v248_v23, 14 }
  0x40   : > { %v314_v3 = vld [vmem:[#allocation2 + $0x8] sm:$0xf]  ;;  %v313_v4 = vld [vmem:[#allocation2] sm:$0xff]  ;;  %v372_v11 = vld [vmem:[#allocation2 + $0xc] sm:$0xf] }
  0x41   : > { %322 = vrot.lane.b32.xlu0 %v314_v3, %s1158_s29  ;;  %318 = vrot.lane.b32.xlu1 %v313_v4, %s1158_s29  ;;  %v255_v5 = vld [vmem:[#allocation2 + $0x8] sm:$0xf]  ;;  %v258_v6 = vcombine.high %v313_v4, %v313_v4  ;;  %v278_v9 = vcombine.low %v313_v4, %v313_v4  ;;  %v1046_v12 = vld [vmem:[#allocation2 + $0xc] ss:$0 sps:$4 sm:$0xff]  }
  0x42   : > { %v294_v7 = vld [vmem:[#allocation2 + $0x8] sm:$0xf]  ;;  %v411_v14 = vld [vmem:[#allocation2 + $0xc] sm:$0xf] }
  0x43   : > { %v1043_v8 = vld [vmem:[#allocation2 + $0x8] ss:$0 sps:$4 sm:$0xff]  }
  0x45   : > { %263 = vrot.lane.b32.xlu0 %v255_v5, %s1159_s12  ;;  %259 = vrot.lane.b32.xlu1 %v313_v4, %s1159_s12 }
  0x49   : > { %302 = vrot.lane.b32.xlu0 %v294_v7, %s1160_s14  ;;  %261 = vrot.lane.b32.xlu1 %v258_v6, %s1159_s12 }
  0x4d   : > { %282 = vrot.lane.b32.xlu0 %v313_v4, %s1161_s16  ;;  %300 = vrot.lane.b32.xlu1 %v258_v6, %s1160_s14 }
  0x51   : > { %320 = vrot.lane.b32.xlu0 %v258_v6, %s1158_s29  ;;  %284 = vrot.lane.b32.xlu1 %v1043_v8, %s1161_s16 }
  0x55   : > { %298 = vrot.lane.b32.xlu0 %v313_v4, %s1160_s14  ;;  %280 = vrot.lane.b32.xlu1 %v278_v9, %s1161_s16 }
  0x59   : > { %352 = vrot.lane.b32.xlu0 %v1318_v2, %s1162_s25  ;;  %354 = vrot.lane.b32.xlu1 %v346_v10, %s1162_s25 }
  0x5d   : > { %350 = vrot.lane.b32.xlu0 %v1313_v1, %s1162_s25  ;;  %378 = vrot.lane.b32.xlu1 %v1318_v2, %s1163_s26 }
  0x61   : > { %380 = vrot.lane.b32.xlu0 %v372_v11, %s1163_s26  ;;  %376 = vrot.lane.b32.xlu1 %v1313_v1, %s1163_s26 }
  0x65   : > { %399 = vrot.lane.b32.xlu0 %v1313_v1, %s1164_s28  ;;  %401 = vrot.lane.b32.xlu1 %v1046_v12, %s1164_s28 }
  0x69   : > { %397 = vrot.lane.b32.xlu0 %v395_v13, %s1164_s28  ;;  %417 = vrot.lane.b32.xlu1 %v1318_v2, %s1165_s8 }
  0x6d   : > { %419 = vrot.lane.b32.xlu0 %v411_v14, %s1165_s8  ;;  %415 = vrot.lane.b32.xlu1 %v1313_v1, %s1165_s8 }
  0x71   : > { %444 = vperm.xlu0 %1041, %v441_v16  }
  0xb3   : > { %v323_v20 = vpop.permute.xlu0 %322  ;;  %v319_v21 = vpop.permute.xlu1 %318 }
  0xb7   : > { %v264_v24 = vpop.permute.xlu0 %263  ;;  %v260_v25 = vpop.permute.xlu1 %259 }
  0xbb   : > { %v303_v28 = vpop.permute.xlu0 %302  ;;  %v262_v29 = vpop.permute.xlu1 %261 }
  0xbc   : > { %v266_v30 = vsel %vm265_vm0, %v260_v25, %v262_v29  ;;  %v267_v31 = vsel %vm265_vm0, %v262_v29, %v264_v24 }
  0xbd   : > { %v270_v32 = vsel %vm1358_vm1, %v266_v30, 0.0  ;;  %v271_v33 = vsel %vm1362_vm2, %v267_v31, 0.0 }
  0xbe   : > { %272 = vst [vmem:[#allocation3] sm:$0xf] %v270_v32  ;;  %273 = vst [vmem:[#allocation3 + $0x8] sm:$0xf] %v271_v33 }
  0xbf   : > { %v283_v35 = vpop.permute.xlu0 %282  ;;  %v301_v36 = vpop.permute.xlu1 %300 }
  0xc0   : > { %v306_v37 = vsel %vm304_vm3, %v301_v36, %v303_v28 }
  0xc1   : > { %v310_v38 = vsel %vm1372_vm4, %v306_v37, 0.0 }
  0xc2   : > { %312 = vst [vmem:[#allocation3 + $0x18] sm:$0xf] %v310_v38 }
  0xc3   : > { %v321_v39 = vpop.permute.xlu0 %320  ;;  %v285_v40 = vpop.permute.xlu1 %284 }
  0xc4   : > { %v325_v41 = vsel %vm324_vm5, %v319_v21, %v321_v39  ;;  %v326_v42 = vsel %vm324_vm5, %v321_v39, %v323_v20  ;;  %v288_v43 = vsel %vm286_vm6, %v283_v35, %v285_v40 }
  0xc5   : > { %v329_v44 = vsel %vm1358_vm1, %v325_v41, 0.0  ;;  %v330_v45 = vsel %vm1362_vm2, %v326_v42, 0.0  ;;  %292 = vst [vmem:[#allocation3 + $0x8] sm:$0xf0] %v288_v43 }
  0xc6   : > { %v333_v46 = vrot.slane %v329_v44, 4  ;;  %v334_v47 = vrot.slane %v330_v45, 4 }
  0xc7   : > { %v299_v49 = vpop.permute.xlu0 %298  ;;  %v281_v50 = vpop.permute.xlu1 %280 }
  0xc8   : > { %337 = vst [vmem:[#allocation3 + $0x10] sm:$0xf0] %v333_v46  ;;  %338 = vst [vmem:[#allocation3 + $0x18] sm:$0xf0] %v334_v47  ;;  %v305_v51 = vsel %vm304_vm3, %v299_v49, %v301_v36  ;;  %v287_v52 = vsel %vm286_vm6, %v281_v50, %v283_v35  ;;  %v430_v35 = vld [vmem:[%s1554_s1] sm:$0xf] }
  0xc9   : > { %v309_v53 = vsel %vm1386_vm7, %v305_v51, 0.0  ;;  %291 = vst [vmem:[#allocation3] sm:$0xf0] %v287_v52 }
  0xca   : > { %311 = vst [vmem:[#allocation3 + $0x10] sm:$0xf] %v309_v53 }
  0xcb   : > { %v353_v54 = vpop.permute.xlu0 %352  ;;  %v355_v55 = vpop.permute.xlu1 %354 }
  0xcc   : > { %v358_v56 = vsel %vm356_vm8, %v353_v54, %v355_v55  ;;  %v432_v61 = vld [vmem:[#allocation3 + $0x8] sm:$0xff] }
  0xcd   : > { %v362_v57 = vsel %vm1372_vm4, %v358_v56, 0.0  ;;  %v649_v56 = vld [vmem:[#allocation2 + $0xc] sm:$0xf] }
  0xce   : > { %v366_v58 = vrot.slane %v362_v57, 4  ;;  %v1048_v57 = vld [vmem:[#allocation2 + $0xc] ss:$0 sps:$4 sm:$0xff]  }
  0xcf   : > { %v351_v59 = vpop.permute.xlu0 %350  ;;  %v379_v60 = vpop.permute.xlu1 %378  ;;  %v434_v62 = vld [vmem:[#allocation3 + $0x18] sm:$0xff] }
  0xd0   : > { %370 = vst [vmem:[#allocation3 + $0x28] sm:$0xf0] %v366_v58  ;;  %v357_v63 = vsel %vm356_vm8, %v351_v59, %v353_v54  ;;  %v969_v0 = vpack.c.bf16 %v434_v62, %v432_v61  ;;  %v431_v3 = vld [vmem:[#allocation3] sm:$0xff]  ;;  %v674_v58 = vld [vmem:[#allocation2 + $0xc] sm:$0xf] }
  0xd1   : > { %v361_v4 = vsel %vm1386_vm7, %v357_v63, 0.0  ;;  %v433_v5 = vld [vmem:[#allocation3 + $0x10] sm:$0xff] }
  0xd2   : > { %v365_v6 = vrot.slane %v361_v4, 4  ;;  %970 = vmatprep.subr.bf16.mxu0 %v969_v0  ;;  %v971_v7 = vpack.c.bf16 %v433_v5, %v431_v3 }
  0xd3   : > { %v381_v8 = vpop.permute.xlu0 %380  ;;  %v377_v9 = vpop.permute.xlu1 %376 }
  0xd4   : > { %369 = vst [vmem:[#allocation3 + $0x20] sm:$0xf0] %v365_v6  ;;  %v384_v10 = vsel %vm382_vm9, %v379_v60, %v381_v8  ;;  %v383_v11 = vsel %vm382_vm9, %v377_v9, %v379_v60  ;;  %972 = vmatpush1.bf16.msra.mxu0 %v971_v7 }
  0xd5   : > { %v388_v12 = vsel %vm1362_vm2, %v384_v10, 0.0  ;;  %v387_v13 = vsel %vm1358_vm1, %v383_v11, 0.0 }
  0xd6   : > { %390 = vst [vmem:[#allocation3 + $0x38] sm:$0xf] %v388_v12  ;;  %389 = vst [vmem:[#allocation3 + $0x30] sm:$0xf] %v387_v13 }
  0xd7   : > { %v400_v14 = vpop.permute.xlu0 %399  ;;  %v402_v15 = vpop.permute.xlu1 %401  ;;  %v436_v24 = vld [vmem:[#allocation3 + $0x28] sm:$0xff] }
  0xd8   : > { %v405_v16 = vsel %vm403_vm10, %v400_v14, %v402_v15 }
  0xd9   : > { %409 = vst [vmem:[#allocation3 + $0x38] sm:$0xf0] %v405_v16 }
  0xdb   : > { %v398_v17 = vpop.permute.xlu0 %397  ;;  %v418_v18 = vpop.permute.xlu1 %417  ;;  %v435_v31 = vld [vmem:[#allocation3 + $0x20] sm:$0xff] }
  0xdc   : > { %v404_v19 = vsel %vm403_vm10, %v398_v17, %v400_v14  ;;  %v711_v17 = vld [vmem:[#allocation2 + $0xc] sm:$0xf] }
  0xdd   : > { %408 = vst [vmem:[#allocation3 + $0x30] sm:$0xf0] %v404_v19 }
  0xdf   : > { %v420_v20 = vpop.permute.xlu0 %419  ;;  %v416_v21 = vpop.permute.xlu1 %415 }
  0xe0   : > { %v423_v22 = vsel %vm421_vm11, %v418_v18, %v420_v20  ;;  %v422_v23 = vsel %vm421_vm11, %v416_v21, %v418_v18  ;;  %v438_v25 = vld [vmem:[#allocation3 + $0x38] sm:$0xff]  ;;  %v740_v18 = vld [vmem:[%s1557_s4] sm:$0xf] }
  0xe1   : > { %v427_v28 = vsel %vm1372_vm4, %v423_v22, 0.0  ;;  %v426_v29 = vsel %vm1386_vm7, %v422_v23, 0.0  ;;  %v973_v30 = vpack.c.bf16 %v438_v25, %v436_v24 }
  0xe2   : > { %429 = vst [vmem:[#allocation3 + $0x48] sm:$0xf] %v427_v28  ;;  %428 = vst [vmem:[#allocation3 + $0x40] sm:$0xf] %v426_v29 }
  0xe3   : > { %974 = vmatprep.subr.bf16.mxu0 %v973_v30 }
  0xe4   : > { %v437_v32 = vld [vmem:[#allocation3 + $0x30] sm:$0xff] }
  0xe5   : > { %v975_v33 = vpack.c.bf16 %v437_v32, %v435_v31 }
  0xe7   : > { %976 = vmatpush1.bf16.msra.mxu0 %v975_v33 }
  0xe9   : > { %v440_v36 = vld [vmem:[#allocation3 + $0x48] sm:$0xf]  ;;  %v439_v37 = vld [vmem:[#allocation3 + $0x40] sm:$0xf] }
  0xea   : > { %956 = vmatprep.subr.msk.mxu0 %vm451_vm12, %v440_v36 }
  0xeb   : > { %957 = vmatpush1.msk.msra.mxu0 %vm451_vm12, %v439_v37 }
  0xec   : > { %958 = vmatmul.mubr.msk.f32.vlgmr.msra.gmra.mrb[0].mxu0 %vm447_vm13, %v430_v35 }
  0xf0   : > { %v445_v38 = vpop.permute.xlu0 %444 }
 0x1bf   : > { %v524_v39 = vpop.f32.mrb[0].mxu0 }
 0x1c0   : > { %v525_v40 = vadd.f32 %v524_v39, %v445_v38  ;;  %v526_v41 = vpop.f32.mrb[1].mxu0 }
 0x1c1   : > { %v527_v42 = vadd.f32 %v526_v41, %v445_v38 }
 0x1c2   : > { %v529_v43 = vsel %vm451_vm12, %v525_v40, 0.0 }
 0x1c3   : > { %v530_v44 = vsel %vm451_vm12, %v527_v42, 0.0 }
 0x1c4   : > { %v531_v45 = vadd.f32 %v530_v44, %v529_v43 }
 0x1c6   : > { %532 = vadd.xlane.f32.xlu1 %v531_v45 }
 0x1d7   : > { %657 = vrot.lane.b32.xlu1 %v649_v56, %s1162_s25 }
 0x1db   : > { %702 = vrot.lane.b32.xlu1 %v1048_v57, %s1164_s28 }
 0x253   : > { %v533_v46 = vpop.xlane.xlu1 %532 }
 0x254   : > { %v535_v47 = vmul.f32 0.00390625, %v533_v46 }
 0x256   : > { %v536_v49 = vsub.f32 %v525_v40, %v535_v47  ;;  %v537_v50 = vsub.f32 %v527_v42, %v535_v47 }
 0x257   : > { %v658_v19 = vpop.permute.xlu1 %657 }
 0x258   : > { %v538_v51 = vmul.f32 %v536_v49, %v536_v49  ;;  %v539_v52 = vmul.f32 %v537_v50, %v537_v50 }
 0x25a   : > { %v540_v53 = vsel %vm451_vm12, %v538_v51, 0.0  ;;  %v541_v54 = vsel %vm451_vm12, %v539_v52, 0.0 }
 0x25b   : > { %v542_v55 = vadd.f32 %v541_v54, %v540_v53  ;;  %v703_v21 = vpop.permute.xlu1 %702 }
 0x25d   : > { %543 = vadd.xlane.f32.xlu0 %v542_v55 }
 0x273   : > { %682 = vrot.lane.b32.xlu0 %v674_v58, %s1163_s26 }
 0x2ea   : > { %v544_v59 = vpop.xlane.xlu0 %543 }
 0x2eb   : > { %v545_v60 = vmul.f32 0.00390625, %v544_v59 }
 0x2ed   : > { %v546_v61 = vadd.f32 1e-05, %v545_v60 }
 0x2ee   : > { %v683_v20 = vpop.permute.xlu0 %682 }
 0x2ef   : > { %1052 = vrsqrt.f32 %v546_v61 }
 0x2f9   : > { %v1053_v62 = vpop.eup %1052 }
 0x2fa   : > { %v548_v63 = vmul.f32 %v1053_v62, %v536_v49  ;;  %v549_v0 = vmul.f32 %v1053_v62, %v537_v50 }
 0x2fc   : > { %vm550_vm14 = vcmp.gt.f32.partialorder %v548_v63, 0.0  ;;  %vm551_vm15 = vcmp.gt.f32.partialorder %v549_v0, 0.0  ;;  %v552_v3 = vmul.f32 0.2, %v548_v63  ;;  %v553_v4 = vmul.f32 0.2, %v549_v0 }
 0x2fe   : > { %v554_v5 = vsel %vm550_vm14, %v548_v63, %v552_v3  ;;  %v555_v6 = vsel %vm551_vm15, %v549_v0, %v553_v4 }
 0x2ff   : > { %v558_v7 = vcombine.low %v554_v5, %v555_v6  ;;  %v1056_v8 = vcombine.low %v555_v6, %v555_v6  ;;  %v1057_v16 = vcombine.low %v554_v5, %v554_v5 }
 0x301   : > { %560 = vst [vmem:[#allocation2 + $0x4] sm:$0xff] %v558_v7  ;;  %646 = vst [vmem:[#allocation3 + $0x20] sm:$0xf] %v558_v7 }
 0x302   : > { %647 = vst [vmem:[#allocation3 + $0x28] sm:$0xf] %v1056_v8 }
 0x308   : > { %v618_v9 = vld [vmem:[#allocation2 + $0x8] sm:$0xf]  ;;  %v617_v10 = vld [vmem:[#allocation2] sm:$0xff] }
 0x309   : > { %626 = vrot.lane.b32.xlu0 %v618_v9, %s1158_s29  ;;  %622 = vrot.lane.b32.xlu1 %v617_v10, %s1158_s29  ;;  %v562_v11 = vld [vmem:[#allocation2 + $0x8] sm:$0xf]  ;;  %v621_v13 = vcombine.high %v617_v10, %v617_v10  ;;  %v584_v15 = vcombine.low %v617_v10, %v617_v10 }
 0x30a   : > { %v599_v12 = vld [vmem:[#allocation2 + $0x8] sm:$0xf] }
 0x30b   : > { %v1051_v14 = vld [vmem:[#allocation2 + $0x8] ss:$0 sps:$4 sm:$0xff]  }
 0x30d   : > { %570 = vrot.lane.b32.xlu0 %v562_v11, %s1159_s12  ;;  %566 = vrot.lane.b32.xlu1 %v617_v10, %s1159_s12 }
 0x311   : > { %607 = vrot.lane.b32.xlu0 %v599_v12, %s1160_s14  ;;  %678 = vrot.lane.b32.xlu1 %v558_v7, %s1163_s26 }
 0x315   : > { %588 = vrot.lane.b32.xlu0 %v617_v10, %s1161_s16  ;;  %624 = vrot.lane.b32.xlu1 %v621_v13, %s1158_s29 }
 0x319   : > { %603 = vrot.lane.b32.xlu0 %v617_v10, %s1160_s14  ;;  %568 = vrot.lane.b32.xlu1 %v621_v13, %s1159_s12 }
 0x31d   : > { %653 = vrot.lane.b32.xlu0 %v558_v7, %s1162_s25  ;;  %605 = vrot.lane.b32.xlu1 %v621_v13, %s1160_s14  ;;  %s968_s14 = sshll.u32 %s1219_s22, 7  ;;  %s863_s22 = scalar_lea.sflag [#allocation6], %s1303_s13 }
 0x321   : > { %700 = vrot.lane.b32.xlu0 %v558_v7, %s1164_s28  ;;  %590 = vrot.lane.b32.xlu1 %v1051_v14, %s1161_s16 }
 0x325   : > { %655 = vrot.lane.b32.xlu0 %v1056_v8, %s1162_s25  ;;  %586 = vrot.lane.b32.xlu1 %v584_v15, %s1161_s16  ;;  %s240_s16 = scalar_lea.vmem [#allocation7], %s954_s17 }
 0x326   : > { %s877_s25 = sshll.u32 %s240_s16, 4  ;;  %s1511_s25 = int_to_ptr.vmem [resolvable:$true] %s877_s25 }
 0x327   : > { %s1088_s17 = scalar_lea.vmem %s1511_s25, 128  ;;  %p1095_p7 = scmp.lt.s32.totalorder %s1511_s25, %s1093_s9 }
 0x328   : > { %p1089_p6 = scmp.ne.s32.totalorder %s1511_s25, %s1088_s17  ;;  %p1096_p10 = scmp.lt.s32.totalorder %s1094_s10, %s1088_s17 }
 0x329   : > { %698 = vrot.lane.b32.xlu0 %v1057_v16, %s1164_s28  ;;  %680 = vrot.lane.b32.xlu1 %v1056_v8, %s1163_s26 }
 0x32a   : > { %p1090_p12 = pnand %p1089_p6, %p1575_p11  ;;  %p1097_p2 = por %p1096_p10, %p1095_p7 }
 0x32c   : > { %p1091_p13 = pneg %p1090_p12 }
 0x32d   : > { %719 = vrot.lane.b32.xlu0 %v711_v17, %s1165_s8  ;;  %717 = vrot.lane.b32.xlu1 %v1056_v8, %s1165_s8 }
 0x32e   : > { %p1098_p4 = pnand %p1097_p2, %p1091_p13 }
 0x331   : > { %743 = vperm.xlu0 %1041, %v740_v18   ;;  %715 = vrot.lane.b32.xlu1 %v558_v7, %s1165_s8  ;;  %s1509_s8 = scalar_lea.hbm %s1558_s5, %s968_s14 }
 0x37b   : > { %v627_v22 = vpop.permute.xlu0 %626  ;;  %v623_v23 = vpop.permute.xlu1 %622 }
 0x37f   : > { %v571_v24 = vpop.permute.xlu0 %570  ;;  %v567_v25 = vpop.permute.xlu1 %566 }
 0x383   : > { %v608_v28 = vpop.permute.xlu0 %607  ;;  %v679_v29 = vpop.permute.xlu1 %678 }
 0x387   : > { %v589_v30 = vpop.permute.xlu0 %588  ;;  %v625_v31 = vpop.permute.xlu1 %624 }
 0x388   : > { %v628_v32 = vsel %vm324_vm5, %v623_v23, %v625_v31  ;;  %v629_v33 = vsel %vm324_vm5, %v625_v31, %v627_v22 }
 0x389   : > { %v632_v35 = vsel %vm1358_vm1, %v628_v32, 0.0  ;;  %v633_v36 = vsel %vm1362_vm2, %v629_v33, 0.0 }
 0x38a   : > { %v636_v37 = vrot.slane %v632_v35, 4  ;;  %v637_v38 = vrot.slane %v633_v36, 4 }
 0x38b   : > { %v604_v39 = vpop.permute.xlu0 %603  ;;  %v569_v40 = vpop.permute.xlu1 %568 }
 0x38c   : > { %640 = vst [vmem:[#allocation3 + $0x10] sm:$0xf0] %v636_v37  ;;  %641 = vst [vmem:[#allocation3 + $0x18] sm:$0xf0] %v637_v38  ;;  %v572_v41 = vsel %vm265_vm0, %v567_v25, %v569_v40  ;;  %v573_v42 = vsel %vm265_vm0, %v569_v40, %v571_v24 }
 0x38d   : > { %v576_v43 = vsel %vm1358_vm1, %v572_v41, 0.0  ;;  %v577_v44 = vsel %vm1362_vm2, %v573_v42, 0.0 }
 0x38e   : > { %578 = vst [vmem:[#allocation3] sm:$0xf] %v576_v43  ;;  %579 = vst [vmem:[#allocation3 + $0x8] sm:$0xf] %v577_v44 }
 0x38f   : > { %v654_v45 = vpop.permute.xlu0 %653  ;;  %v606_v46 = vpop.permute.xlu1 %605 }
 0x390   : > { %v609_v47 = vsel %vm304_vm3, %v604_v39, %v606_v46  ;;  %v610_v49 = vsel %vm304_vm3, %v606_v46, %v608_v28 }
 0x391   : > { %v613_v50 = vsel %vm1386_vm7, %v609_v47, 0.0  ;;  %v614_v51 = vsel %vm1372_vm4, %v610_v49, 0.0 }
 0x392   : > { %615 = vst [vmem:[#allocation3 + $0x10] sm:$0xf] %v613_v50  ;;  %616 = vst [vmem:[#allocation3 + $0x18] sm:$0xf] %v614_v51 }
 0x393   : > { %v701_v52 = vpop.permute.xlu0 %700  ;;  %v591_v53 = vpop.permute.xlu1 %590 }
 0x394   : > { %v705_v54 = vsel %vm403_vm10, %v701_v52, %v703_v21  ;;  %v593_v55 = vsel %vm286_vm6, %v589_v30, %v591_v53 }
 0x395   : > { %709 = vst [vmem:[#allocation3 + $0x38] sm:$0xf0] %v705_v54  ;;  %597 = vst [vmem:[#allocation3 + $0x8] sm:$0xf0] %v593_v55 }
 0x397   : > { %v656_v56 = vpop.permute.xlu0 %655  ;;  %v587_v57 = vpop.permute.xlu1 %586 }
 0x398   : > { %v659_v58 = vsel %vm356_vm8, %v654_v45, %v656_v56  ;;  %v660_v59 = vsel %vm356_vm8, %v656_v56, %v658_v19  ;;  %v592_v60 = vsel %vm286_vm6, %v587_v57, %v589_v30 }
 0x399   : > { %v663_v61 = vsel %vm1386_vm7, %v659_v58, 0.0  ;;  %v664_v62 = vsel %vm1372_vm4, %v660_v59, 0.0  ;;  %596 = vst [vmem:[#allocation3] sm:$0xf0] %v592_v60  ;;  %v733_v9 = vld [vmem:[#allocation3 + $0x18] sm:$0xff]  ;;  %v732_v17 = vld [vmem:[#allocation3 + $0x10] sm:$0xff] }
 0x39a   : > { %v667_v63 = vrot.slane %v663_v61, 4  ;;  %v668_v0 = vrot.slane %v664_v62, 4 }
 0x39b   : > { %v699_v3 = vpop.permute.xlu0 %698  ;;  %v681_v4 = vpop.permute.xlu1 %680 }
 0x39c   : > { %671 = vst [vmem:[#allocation3 + $0x20] sm:$0xf0] %v667_v63  ;;  %672 = vst [vmem:[#allocation3 + $0x28] sm:$0xf0] %v668_v0  ;;  %v704_v5 = vsel %vm403_vm10, %v699_v3, %v701_v52  ;;  %v684_v6 = vsel %vm382_vm9, %v679_v29, %v681_v4  ;;  %v685_v7 = vsel %vm382_vm9, %v681_v4, %v683_v20  ;;  %v731_v8 = vld [vmem:[#allocation3 + $0x8] sm:$0xff] }
 0x39d   : > { %708 = vst [vmem:[#allocation3 + $0x30] sm:$0xf0] %v704_v5  ;;  %v688_v10 = vsel %vm1358_vm1, %v684_v6, 0.0  ;;  %v689_v11 = vsel %vm1362_vm2, %v685_v7, 0.0  ;;  %v977_v12 = vpack.c.bf16 %v733_v9, %v731_v8  ;;  %v729_v29 = vld [vmem:[%s1556_s3] sm:$0xf] }
 0x39e   : > { %690 = vst [vmem:[#allocation3 + $0x30] sm:$0xf] %v688_v10  ;;  %691 = vst [vmem:[#allocation3 + $0x38] sm:$0xf] %v689_v11 }
 0x39f   : > { %v720_v13 = vpop.permute.xlu0 %719  ;;  %978 = vmatprep.subr.bf16.mxu1 %v977_v12  ;;  %v718_v14 = vpop.permute.xlu1 %717 }
 0x3a0   : > { %v722_v15 = vsel %vm421_vm11, %v718_v14, %v720_v13  ;;  %v730_v16 = vld [vmem:[#allocation3] sm:$0xff] }
 0x3a1   : > { %v726_v18 = vsel %vm1372_vm4, %v722_v15, 0.0  ;;  %v979_v19 = vpack.c.bf16 %v732_v17, %v730_v16 }
 0x3a2   : > { %728 = vst [vmem:[#allocation3 + $0x48] sm:$0xf] %v726_v18 }
 0x3a3   : > { %980 = vmatpush1.bf16.msra.mxu1 %v979_v19  ;;  %v716_v26 = vpop.permute.xlu1 %715  ;;  %v735_v20 = vld [vmem:[#allocation3 + $0x28] sm:$0xff]  ;;  %v734_v23 = vld [vmem:[#allocation3 + $0x20] sm:$0xff] }
 0x3a4   : > { %v721_v27 = vsel %vm421_vm11, %v716_v26, %v718_v14 }
 0x3a5   : > { %v725_v21 = vsel %vm1386_vm7, %v721_v27, 0.0  ;;  %v737_v22 = vld [vmem:[#allocation3 + $0x38] sm:$0xff]  ;;  %v736_v24 = vld [vmem:[#allocation3 + $0x30] sm:$0xff] }
 0x3a6   : > { %727 = vst [vmem:[#allocation3 + $0x40] sm:$0xf] %v725_v21  ;;  %v981_v25 = vpack.c.bf16 %v737_v22, %v735_v20  ;;  %v983_v28 = vpack.c.bf16 %v736_v24, %v734_v23 }
 0x3a8   : > { %982 = vmatprep.subr.bf16.mxu1 %v981_v25 }
 0x3a9   : > { %984 = vmatpush1.bf16.msra.mxu1 %v983_v28  ;;  %v739_v34 = vld [vmem:[#allocation3 + $0x48] sm:$0xf] }
 0x3aa   : > { %959 = vmatprep.subr.msk.mxu1 %vm451_vm12, %v739_v34 }
 0x3ad   : > { %v738_v30 = vld [vmem:[#allocation3 + $0x40] sm:$0xf] }
 0x3ae   : > { %960 = vmatpush1.msk.msra.mxu1 %vm451_vm12, %v738_v30 }
 0x3af   : > { %961 = vmatmul.mubr.msk.f32.vlgmr.msra.gmra.mrb[0].mxu1 %vm447_vm13, %v729_v29 }
 0x3b0   : > { %v744_v48 = vpop.permute.xlu0 %743 }
 0x482   : > { %v821_v31 = vpop.f32.mrb[0].mxu1 }
 0x483   : > { %v822_v32 = vadd.f32 %v821_v31, %v744_v48  ;;  %v823_v33 = vpop.f32.mrb[1].mxu1 }
 0x484   : > { %v824_v35 = vadd.f32 %v823_v33, %v744_v48 }
 0x485   : > { %v826_v36 = vsel %vm451_vm12, %v822_v32, 0.0 }
 0x486   : > { %v827_v37 = vsel %vm451_vm12, %v824_v35, 0.0 }
 0x487   : > { %v828_v38 = vadd.f32 %v827_v37, %v826_v36 }
 0x489   : > { %829 = vadd.xlane.f32.xlu1 %v828_v38 }
 0x516   : > { %v830_v39 = vpop.xlane.xlu1 %829 }
 0x517   : > { %v831_v40 = vmul.f32 0.00390625, %v830_v39 }
 0x519   : > { %v832_v41 = vsub.f32 %v822_v32, %v831_v40  ;;  %v833_v42 = vsub.f32 %v824_v35, %v831_v40 }
 0x51b   : > { %v834_v43 = vmul.f32 %v832_v41, %v832_v41  ;;  %v835_v44 = vmul.f32 %v833_v42, %v833_v42 }
 0x51d   : > { %v836_v45 = vsel %vm451_vm12, %v834_v43, 0.0  ;;  %v837_v46 = vsel %vm451_vm12, %v835_v44, 0.0 }
 0x51e   : > { %v838_v47 = vadd.f32 %v837_v46, %v836_v45 }
 0x520   : > { %839 = vadd.xlane.f32.xlu0 %v838_v47 }
 0x5ad   : > { %v840_v49 = vpop.xlane.xlu0 %839 }
 0x5ae   : > { %v841_v50 = vmul.f32 0.00390625, %v840_v49 }
 0x5b0   : > { %v842_v51 = vadd.f32 1e-05, %v841_v50 }
 0x5b2   : > { %1054 = vrsqrt.f32 %v842_v51 }
 0x5bc   : > { %v1055_v52 = vpop.eup %1054 }
 0x5bd   : > { %v844_v53 = vmul.f32 %v1055_v52, %v832_v41  ;;  %v845_v54 = vmul.f32 %v1055_v52, %v833_v42 }
 0x5bf   : > { %v849_v55 = vadd.f32 %v844_v53, %v1313_v1  ;;  %v850_v56 = vadd.f32 %v845_v54, %v1318_v2 }
 0x5c1   : > { %vm851_vm0 = vcmp.gt.f32.partialorder %v849_v55, 0.0  ;;  %vm852_vm1 = vcmp.gt.f32.partialorder %v850_v56, 0.0  ;;  %v853_v57 = vmul.f32 0.2, %v849_v55  ;;  %v854_v58 = vmul.f32 0.2, %v850_v56 }
 0x5c3   : > { %v855_v59 = vsel %vm851_vm0, %v849_v55, %v853_v57  ;;  %v856_v60 = vsel %vm852_vm1, %v850_v56, %v854_v58 }
 0x5c4   : > { %v859_v61 = vcombine.low %v855_v59, %v856_v60 }
 0x5c6   : > { %861 = vst [vmem:[%s240_s16] sm:$0xff] %v859_v61 }
 0x5c7   : > { %1101 = shalt.err (!%p1098_p4)
}
 0x5c8   : > { %s1102_s13 = scalar_lea.hbm %s1509_s8, 128  ;;  %s1106_s15 = scalar_lea.hbm %s1558_s5, 256 }
 0x5c9   : > { %p1103_p5 = scmp.ne.s32.totalorder %s1509_s8, %s1102_s13  ;;  %p1107_p0 = scmp.lt.u32.totalorder %s1509_s8, %s1558_s5 }
 0x5ca   : > { %p1108_p1 = scmp.lt.u32.totalorder %s1106_s15, %s1102_s13  ;;  %p1110_p6 = scmp.lt.u32.totalorder %s1102_s13, %s1509_s8 }
 0x5cb   : > { %p1104_p8 = pnand %p1103_p5, %p1575_p11 }
 0x5cc   : > { %p1109_p3 = por %p1108_p1, %p1107_p0 }
 0x5cd   : > { %p1105_p9 = pneg %p1104_p8 }
 0x5ce   : > { %p1111_p12 = por %p1110_p6, %p1109_p3 }
 0x5d0   : > { %p1112_p13 = pnand %p1111_p12, %p1105_p9 }
 0x5d2   : > { %1115 = shalt.err (!%p1112_p13)
}
 0x5d3   : > { %987 = dma.vmem_to_hbm [thread:$0]  (%p1575_p11), %s1511_s25, 128, %s1509_s8, %s863_s22  }
 0x5d4 PF: > { %s889_s14 = sand.u32 1, %s1142_s18   ;;  %p1576_p7 = scmp.ne.s32.totalorder %s1563_s6, 0 }
 0x5d5   : > { %p1577_p10 = scmp.ge.s32.totalorder %s1154_s21, 2  ;;  %s890_s16 = scalar_lea.sflag [#allocation6], %s889_s14 }
 0x5d7   : > { %p994_p2 = pnand %p1577_p10, %p1576_p7 }
 0x5d9   : > { %1137 = dma.done.wait (!%p994_p2), %s890_s16, 128  }
 0x5da   : > { %1139 = vsyncadd (!%p994_p2), %s890_s16, 4294967168  ;;  %p18_p4 = scmp.ge.s32.totalorder %s1223_s24, 4   ;;  %s1578_s18 = smov %s1146_s19 }
 0x5db   : > { %s1579_s19 = smov %s1150_s20  ;;  %s1580_s20 = smov %s1235_s27 }
 0x5dc   : > { %s1581_s21 = smov %s1223_s24  ;;  %20 = sbr.rel (!%p18_p4) target bundleno = 5 (0x5), region = 85 }
 0x5e3   :  { %895 = vsyncpa [#allocation5], 1 }
 0x5e4   :  { %897 = vsyncpa [#allocation5 + $0x1], 1 }
 0x5e5   :  { %898 = vsyncpa [#allocation6], 1 }
 0x5e6   :  { %900 = vsyncpa [#allocation6 + $0x1], 1 }

</bundles_post_ra>
